<compile_context>
chip_gen: v7x
topology: tpu7x:2x2x1
jax: 0.10.0
libtpu: 0.0.40
codegen_flags: <defaults>
</compile_context>

<pallas_src>
import functools

import jax
import jax.numpy as jnp
from jax.experimental import pallas as pl
from jax.experimental.pallas import tpu as pltpu

UNITS1 = 400
UNITS2 = 300
LANE = 128
SUBLANE = 8
TB_MAX = 512          # batch rows per grid step (f32 state tile stays small)


def _round_up(x, m):
    return ((x + m - 1) // m) * m


# ----------------------------------------------------------------------------
# Kernel
# ----------------------------------------------------------------------------
def actor_kernel(x_ref, w1_ref, b1_ref, w2_ref, b2_ref, w3_ref, b3_ref, o_ref):
    # Cast activations to bf16 only right before each MXU dot; keep all
    # elementwise epilogues in f32 (native VPU dtype on v5e/v6e/v7x).
    x = x_ref[...].astype(jnp.bfloat16)

    # fc1 + ReLU
    h1 = jnp.dot(x, w1_ref[...], preferred_element_type=jnp.float32)
    h1 = jnp.maximum(h1 + b1_ref[...], 0.0)

    # fc2 + ReLU
    h2 = jnp.dot(h1.astype(jnp.bfloat16), w2_ref[...],
                 preferred_element_type=jnp.float32)
    h2 = jnp.maximum(h2 + b2_ref[...], 0.0)

    # fc3 + tanh (EUP)
    h3 = jnp.dot(h2.astype(jnp.bfloat16), w3_ref[...],
                 preferred_element_type=jnp.float32)
    o_ref[...] = jnp.tanh(h3 + b3_ref[...]).astype(o_ref.dtype)


# ----------------------------------------------------------------------------
# Parameter init / preparation
# ----------------------------------------------------------------------------
def init_actor_params(state_size, action_size, seed=0,
                      fc1_units=UNITS1, fc2_units=UNITS2):
    """Deterministic f32 init mirroring Actor.reset_parameters() limits.

    Weights are stored transposed: (in_features, out_features).
    """
    key = jax.random.PRNGKey(seed)
    k1, k2, k3, k4, k5, k6 = jax.random.split(key, 6)

    lim1 = 1.0 / jnp.sqrt(jnp.float32(fc1_units))   # fan_in = weight.size()[0]
    lim2 = 1.0 / jnp.sqrt(jnp.float32(fc2_units))
    lim3 = 0.003

    return {
        "w1": jax.random.uniform(k1, (state_size, fc1_units), jnp.float32, -lim1, lim1),
        "b1": jax.random.uniform(k2, (1, fc1_units), jnp.float32, -lim1, lim1),
        "w2": jax.random.uniform(k3, (fc1_units, fc2_units), jnp.float32, -lim2, lim2),
        "b2": jax.random.uniform(k4, (1, fc2_units), jnp.float32, -lim2, lim2),
        "w3": jax.random.uniform(k5, (fc2_units, action_size), jnp.float32, -lim3, lim3),
        "b3": jax.random.uniform(k6, (1, action_size), jnp.float32, -lim3, lim3),
    }


def prepare_actor_params(raw):
    """One-time padding to lane multiples + bf16 cast of weights.

    400 -> 512, 300 -> 384, action_size -> 128.  Padded columns are zero so
    the math is unchanged.  Biases stay f32 (added to the f32 accumulator).
    """
    def pad2(a, rows, cols):
        return jnp.pad(a, ((0, rows - a.shape[0]), (0, cols - a.shape[1])))

    state_size, h1 = raw["w1"].shape
    h2 = raw["w2"].shape[1]
    act = raw["w3"].shape[1]
    h1p = _round_up(h1, LANE)
    h2p = _round_up(h2, LANE)
    ap = _round_up(act, LANE)

    return {
        "w1": pad2(raw["w1"], state_size, h1p).astype(jnp.bfloat16),
        "b1": pad2(raw["b1"], 1, h1p).astype(jnp.float32),
        "w2": pad2(raw["w2"], h1p, h2p).astype(jnp.bfloat16),
        "b2": pad2(raw["b2"], 1, h2p).astype(jnp.float32),
        "w3": pad2(raw["w3"], h2p, ap).astype(jnp.bfloat16),
        "b3": pad2(raw["b3"], 1, ap).astype(jnp.float32),
    }


# ----------------------------------------------------------------------------
# Forward wrapper
# ----------------------------------------------------------------------------
def actor_forward(state, params, action_size, *, tb_max=TB_MAX):
    """state: (B, state_size) f32.  params: prepared (padded, bf16) params."""
    B, state_size = state.shape
    h1p = params["w1"].shape[1]
    h2p = params["w2"].shape[1]
    ap = params["w3"].shape[1]

    # Pad the batch so the block divides it evenly (and rows are a sublane
    # multiple).  Padded rows produce garbage-free values and are sliced off.
    b_pad = _round_up(B, SUBLANE)
    tb = min(tb_max, b_pad)
    b_pad = _round_up(b_pad, tb)
    if b_pad != B:
        state = jnp.pad(state, ((0, b_pad - B), (0, 0)))

    grid = (b_pad // tb,)

    flops = 2 * b_pad * (state_size * h1p + h1p * h2p + h2p * ap)
    bytes_accessed = (
        b_pad * state_size * 4                      # state in (f32)
        + b_pad * ap * 4                            # out (f32)
        + (params["w1"].size + params["w2"].size + params["w3"].size) * 2  # bf16 weights
        + (h1p + h2p + ap) * 4                      # f32 biases
    )

    const = lambda i: (0, 0)   # weights/biases stay VMEM-resident across the grid

    out = pl.pallas_call(
        actor_kernel,
        out_shape=jax.ShapeDtypeStruct((b_pad, ap), jnp.float32),
        grid=grid,
        in_specs=[
            pl.BlockSpec((tb, state_size), lambda i: (i, 0)),
            pl.BlockSpec((state_size, h1p), const),
            pl.BlockSpec((1, h1p), const),
            pl.BlockSpec((h1p, h2p), const),
            pl.BlockSpec((1, h2p), const),
            pl.BlockSpec((h2p, ap), const),
            pl.BlockSpec((1, ap), const),
        ],
        out_specs=pl.BlockSpec((tb, ap), lambda i: (i, 0)),
        compiler_params=pltpu.CompilerParams(
            dimension_semantics=("parallel",),     # shard batch across v7x TCs
            vmem_limit_bytes=64 << 20,
        ),
        cost_estimate=pl.CostEstimate(
            flops=flops,
            transcendentals=b_pad * ap,
            bytes_accessed=bytes_accessed,
        ),
    )(state, params["w1"], params["b1"], params["w2"], params["b2"],
      params["w3"], params["b3"])

    return out[:B, :action_size]


# ----------------------------------------------------------------------------
# References
# ----------------------------------------------------------------------------
def actor_forward_ref_f32(state, raw):
    h1 = jnp.maximum(state @ raw["w1"] + raw["b1"], 0.0)
    h2 = jnp.maximum(h1 @ raw["w2"] + raw["b2"], 0.0)
    return jnp.tanh(h2 @ raw["w3"] + raw["b3"])


def actor_forward_ref_bf16(state, params, action_size):
    """Reference that mimics the kernel's bf16-in / f32-accumulate pipeline."""
    x = state.astype(jnp.bfloat16)
    h1 = jnp.maximum(
        jnp.dot(x, params["w1"], preferred_element_type=jnp.float32)
        + params["b1"], 0.0)
    h2 = jnp.maximum(
        jnp.dot(h1.astype(jnp.bfloat16), params["w2"],
                preferred_element_type=jnp.float32) + params["b2"], 0.0)
    h3 = jnp.tanh(
        jnp.dot(h2.astype(jnp.bfloat16), params["w3"],
                preferred_element_type=jnp.float32) + params["b3"])
    return h3[:, :action_size]


# ----------------------------------------------------------------------------
if __name__ == "__main__":
    batch = 2
    state_size = 32
    action_size = 4

    key = jax.random.PRNGKey(0)
    state = jax.random.normal(key, (batch, state_size), jnp.float32)

    raw_params = init_actor_params(state_size, action_size, seed=0)
    params = prepare_actor_params(raw_params)

    out = actor_forward(state, params, action_size)
    out = jax.block_until_ready(out)
    assert out.shape == (batch, action_size), out.shape

    # Exact-pipeline reference (bf16 MXU inputs, f32 accumulate).
    ref_bf16 = actor_forward_ref_bf16(state, params, action_size)
    assert jnp.allclose(out, ref_bf16, atol=2e-4, rtol=1e-4), "mismatch vs bf16 reference"

    # Full-precision reference to confirm forward semantics are preserved
    # (loose tolerance covers bf16 rounding of weights/activations).
    ref_f32 = actor_forward_ref_f32(state, raw_params)
    assert jnp.allclose(out, ref_f32, atol=5e-3, rtol=5e-3), "mismatch vs f32 reference"

    print("KERNEL_OK")
</pallas_src>

<mosaic_0001>
module attributes {stable_mosaic.version = 11 : i64} {
  func.func @actor_kernel(%arg0: i32, %arg1: memref<8x32xf32, #tpu.memory_space<vmem>>, %arg2: memref<32x512xbf16, #tpu.memory_space<vmem>>, %arg3: memref<1x512xf32, #tpu.memory_space<vmem>>, %arg4: memref<512x384xbf16, #tpu.memory_space<vmem>>, %arg5: memref<1x384xf32, #tpu.memory_space<vmem>>, %arg6: memref<384x128xbf16, #tpu.memory_space<vmem>>, %arg7: memref<1x128xf32, #tpu.memory_space<vmem>>, %arg8: memref<8x128xf32, #tpu.memory_space<vmem>>) attributes {dimension_semantics = [#tpu.dimension_semantics<parallel>], iteration_bounds = array<i64: 1>, scalar_prefetch = 0 : i64, scratch_operands = 0 : i64, tpu.core_type = #tpu.core_type<tc>, window_params = [{transform_indices = @transform_0, window_bounds = array<i64: 8, 32>}, {pipeline_mode = #tpu.pipeline_mode<synchronous>, transform_indices = @transform_1, window_bounds = array<i64: 32, 512>}, {pipeline_mode = #tpu.pipeline_mode<synchronous>, transform_indices = @transform_2, window_bounds = array<i64: 1, 512>}, {pipeline_mode = #tpu.pipeline_mode<synchronous>, transform_indices = @transform_3, window_bounds = array<i64: 512, 384>}, {pipeline_mode = #tpu.pipeline_mode<synchronous>, transform_indices = @transform_4, window_bounds = array<i64: 1, 384>}, {pipeline_mode = #tpu.pipeline_mode<synchronous>, transform_indices = @transform_5, window_bounds = array<i64: 384, 128>}, {pipeline_mode = #tpu.pipeline_mode<synchronous>, transform_indices = @transform_6, window_bounds = array<i64: 1, 128>}, {transform_indices = @transform_7, window_bounds = array<i64: 8, 128>}]} {
    %c0 = arith.constant 0 : index
    %c0_0 = arith.constant 0 : index
    %0 = vector.load %arg1[%c0, %c0_0] : memref<8x32xf32, #tpu.memory_space<vmem>>, vector<8x32xf32>
    %1 = arith.truncf %0 : vector<8x32xf32> to vector<8x32xbf16>
    %c0_1 = arith.constant 0 : index
    %c0_2 = arith.constant 0 : index
    %2 = vector.load %arg2[%c0_1, %c0_2] : memref<32x512xbf16, #tpu.memory_space<vmem>>, vector<32x512xbf16>
    %cst = arith.constant dense<0.000000e+00> : vector<8x512xf32>
    %3 = tpu.matmul %1, %2, %cst {dimension_numbers = #tpu.dot_dimension_numbers<[1], [0], [0], [1], [0, 0, 1, 1], [], []>} : vector<8x32xbf16>, vector<32x512xbf16>, vector<8x512xf32> -> vector<8x512xf32>
    %c0_3 = arith.constant 0 : index
    %c0_4 = arith.constant 0 : index
    %4 = vector.load %arg3[%c0_3, %c0_4] : memref<1x512xf32, #tpu.memory_space<vmem>>, vector<1x512xf32>
    %5 = vector.broadcast %4 : vector<1x512xf32> to vector<8x512xf32>
    %6 = arith.addf %3, %5 : vector<8x512xf32>
    %cst_5 = arith.constant 0.000000e+00 : f32
    %7 = vector.broadcast %cst_5 : f32 to vector<8x512xf32>
    %8 = arith.maximumf %6, %7 : vector<8x512xf32>
    %9 = arith.truncf %8 : vector<8x512xf32> to vector<8x512xbf16>
    %c0_6 = arith.constant 0 : index
    %c0_7 = arith.constant 0 : index
    %10 = vector.load %arg4[%c0_6, %c0_7] : memref<512x384xbf16, #tpu.memory_space<vmem>>, vector<512x384xbf16>
    %cst_8 = arith.constant dense<0.000000e+00> : vector<8x384xf32>
    %11 = tpu.matmul %9, %10, %cst_8 {dimension_numbers = #tpu.dot_dimension_numbers<[1], [0], [0], [1], [0, 0, 1, 1], [], []>} : vector<8x512xbf16>, vector<512x384xbf16>, vector<8x384xf32> -> vector<8x384xf32>
    %c0_9 = arith.constant 0 : index
    %c0_10 = arith.constant 0 : index
    %12 = vector.load %arg5[%c0_9, %c0_10] : memref<1x384xf32, #tpu.memory_space<vmem>>, vector<1x384xf32>
    %13 = vector.broadcast %12 : vector<1x384xf32> to vector<8x384xf32>
    %14 = arith.addf %11, %13 : vector<8x384xf32>
    %cst_11 = arith.constant 0.000000e+00 : f32
    %15 = vector.broadcast %cst_11 : f32 to vector<8x384xf32>
    %16 = arith.maximumf %14, %15 : vector<8x384xf32>
    %17 = arith.truncf %16 : vector<8x384xf32> to vector<8x384xbf16>
    %c0_12 = arith.constant 0 : index
    %c0_13 = arith.constant 0 : index
    %18 = vector.load %arg6[%c0_12, %c0_13] : memref<384x128xbf16, #tpu.memory_space<vmem>>, vector<384x128xbf16>
    %cst_14 = arith.constant dense<0.000000e+00> : vector<8x128xf32>
    %19 = tpu.matmul %17, %18, %cst_14 {dimension_numbers = #tpu.dot_dimension_numbers<[1], [0], [0], [1], [0, 0, 1, 1], [], []>} : vector<8x384xbf16>, vector<384x128xbf16>, vector<8x128xf32> -> vector<8x128xf32>
    %c0_15 = arith.constant 0 : index
    %c0_16 = arith.constant 0 : index
    %20 = vector.load %arg7[%c0_15, %c0_16] : memref<1x128xf32, #tpu.memory_space<vmem>>, vector<1x128xf32>
    %21 = vector.broadcast %20 : vector<1x128xf32> to vector<8x128xf32>
    %22 = arith.addf %19, %21 : vector<8x128xf32>
    %23 = math.tanh %22 : vector<8x128xf32>
    %c0_17 = arith.constant 0 : index
    %c0_18 = arith.constant 0 : index
    %24 = vector.load %arg8[%c0_17, %c0_18] : memref<8x128xf32, #tpu.memory_space<vmem>>, vector<8x128xf32>
    tpu.vector_store %arg8[%c0_17, %c0_18], %23 {strides = array<i32>} : memref<8x128xf32, #tpu.memory_space<vmem>>, vector<8x128xf32>,
    return
  }
  func.func @transform_0(%arg0: i32) -> (i32, i32) {
    %c0_i32 = arith.constant 0 : i32
    %c0_i32_0 = arith.constant 0 : i32
    return %arg0, %c0_i32 : i32, i32
  }
  func.func @transform_1(%arg0: i32) -> (i32, i32) {
    %c0_i32 = arith.constant 0 : i32
    %c0_i32_0 = arith.constant 0 : i32
    %c0_i32_1 = arith.constant 0 : i32
    return %c0_i32, %c0_i32_0 : i32, i32
  }
  func.func @transform_2(%arg0: i32) -> (i32, i32) {
    %c0_i32 = arith.constant 0 : i32
    %c0_i32_0 = arith.constant 0 : i32
    %c0_i32_1 = arith.constant 0 : i32
    return %c0_i32, %c0_i32_0 : i32, i32
  }
  func.func @transform_3(%arg0: i32) -> (i32, i32) {
    %c0_i32 = arith.constant 0 : i32
    %c0_i32_0 = arith.constant 0 : i32
    %c0_i32_1 = arith.constant 0 : i32
    return %c0_i32, %c0_i32_0 : i32, i32
  }
  func.func @transform_4(%arg0: i32) -> (i32, i32) {
    %c0_i32 = arith.constant 0 : i32
    %c0_i32_0 = arith.constant 0 : i32
    %c0_i32_1 = arith.constant 0 : i32
    return %c0_i32, %c0_i32_0 : i32, i32
  }
  func.func @transform_5(%arg0: i32) -> (i32, i32) {
    %c0_i32 = arith.constant 0 : i32
    %c0_i32_0 = arith.constant 0 : i32
    %c0_i32_1 = arith.constant 0 : i32
    return %c0_i32, %c0_i32_0 : i32, i32
  }
  func.func @transform_6(%arg0: i32) -> (i32, i32) {
    %c0_i32 = arith.constant 0 : i32
    %c0_i32_0 = arith.constant 0 : i32
    %c0_i32_1 = arith.constant 0 : i32
    return %c0_i32, %c0_i32_0 : i32, i32
  }
  func.func @transform_7(%arg0: i32) -> (i32, i32) {
    %c0_i32 = arith.constant 0 : i32
    %c0_i32_0 = arith.constant 0 : i32
    return %arg0, %c0_i32 : i32, i32
  }
}

</mosaic_0001>

<bundles_post_ra>
// kernel: tpu_custom_call.1
= control target key start
LH: loop header
LB: loop body
LE: loop exit
PB: predicated region body
PF: predicated region fallthrough
CT: control target
= control target key end

     0   :  { %12 = vsyncpa [#allocation3], 0  ;;  %s2183_s0 = inlined_call_operand.hbm [shape: f32[8,32], index: 0, kind: input, shape index: {}]   ;;  %s2184_s1 = inlined_call_operand.hbm [shape: bf16[32,512], index: 1, kind: input, shape index: {}]   ;;  %s2185_s2 = inlined_call_operand.hbm [shape: f32[1,512], index: 2, kind: input, shape index: {}]   ;;  %s2186_s3 = inlined_call_operand.hbm [shape: bf16[512,384], index: 3, kind: input, shape index: {}]   ;;  %s2187_s4 = inlined_call_operand.hbm [shape: f32[1,384], index: 4, kind: input, shape index: {}]   ;;  %s2188_s5 = inlined_call_operand.hbm [shape: bf16[384,128], index: 5, kind: input, shape index: {}]   ;;  %s2189_s6 = inlined_call_operand.hbm [shape: f32[1,128], index: 6, kind: input, shape index: {}]   ;;  %s2190_s7 = inlined_call_operand.hbm [shape: f32[8,128], index: 7, kind: output, shape index: {}]  }
   0x1   :  { %13 = vsyncpa [#allocation6], 0 }
   0x2   :  { %14 = vsyncpa [#allocation9], 0 }
   0x3   :  { %15 = vsyncpa [#allocation12], 0 }
   0x4   :  { %16 = vsyncpa [#allocation4], 0  ;;  %s2006_s24 = smov [#allocation5]   ;;  %s1820_s28 = scalar_lea.hbm %s2184_s1, 1024 }
   0x5   :  { %s32_s25 = sshll.u32 %s2006_s24, 4  ;;  %p1821_p0 = scmp.ne.s32.totalorder %s2184_s1, %s1820_s28  ;;  %s33_s25 = int_to_ptr.vmem [resolvable:$true] %s32_s25 }
   0x6   :  { %p1824_p1 = scmp.lt.u32.totalorder %s1820_s28, %s2184_s1 }
   0x8   :  { %p1826_p2 = pnand %p1824_p1, %p1821_p0 }
   0xa   :  { %1829 = shalt.err (!%p1826_p2)
}
   0xb   :  { %s1830_s10 = scalar_lea.vmem %s33_s25, 1024  ;;  %p1835_p4 = scmp.lt.s32.totalorder %s33_s25, %s33_s25 }
   0xc   :  { %p1831_p3 = scmp.ne.s32.totalorder %s33_s25, %s1830_s10  ;;  %p1836_p5 = scmp.lt.s32.totalorder %s1830_s10, %s1830_s10 }
   0xe   :  { %p1837_p6 = por %p1836_p5, %p1835_p4 }
  0x10   :  { %p1838_p7 = pnand %p1837_p6, %p1831_p3 }
  0x12   :  { %1841 = shalt.err (!%p1838_p7)
}
  0x13   :  { %s2007_s11 = smov 256   ;;  %s2008_s12 = smov 16  }
  0x14   :  { %38 = dma.hbm_to_vmem [thread:$0]  %s2184_s1, 1024, %s33_s25, [#allocation6], %s2007_s11, %s2007_s11, %s2008_s12  }
  0x15   :  { %s2009_s15 = smov [#allocation8]   ;;  %s1842_s19 = scalar_lea.hbm %s2186_s3, 12288 }
  0x16   :  { %s54_s16 = sshll.u32 %s2009_s15, 4  ;;  %p1843_p8 = scmp.ne.s32.totalorder %s2186_s3, %s1842_s19  ;;  %s55_s16 = int_to_ptr.vmem [resolvable:$true] %s54_s16 }
  0x17   :  { %p1846_p9 = scmp.lt.u32.totalorder %s1842_s19, %s2186_s3 }
  0x19   :  { %p1848_p10 = pnand %p1846_p9, %p1843_p8 }
  0x1b   :  { %1851 = shalt.err (!%p1848_p10)
}
  0x1c   :  { %s1852_s24 = scalar_lea.vmem %s55_s16, 12288  ;;  %p1857_p12 = scmp.lt.s32.totalorder %s55_s16, %s55_s16 }
  0x1d   :  { %p1853_p11 = scmp.ne.s32.totalorder %s55_s16, %s1852_s24  ;;  %p1858_p13 = scmp.lt.s32.totalorder %s1852_s24, %s1852_s24 }
  0x1f   :  { %p1859_p0 = por %p1858_p13, %p1857_p12 }
  0x21   :  { %p1860_p1 = pnand %p1859_p0, %p1853_p11 }
  0x23   :  { %1863 = shalt.err (!%p1860_p1)
}
  0x24   :  { %s2010_s1 = smov 192   ;;  %s2011_s25 = smov 12  }
  0x25   :  { %60 = dma.hbm_to_vmem [thread:$0]  %s2186_s3, 12288, %s55_s16, [#allocation9], %s2010_s1, %s2010_s1, %s2011_s25  }
  0x26   :  { %s2012_s28 = smov [#allocation11]   ;;  %s1864_s9 = scalar_lea.hbm %s2188_s5, 3072 }
  0x27   :  { %s76_s29 = sshll.u32 %s2012_s28, 4  ;;  %p1865_p2 = scmp.ne.s32.totalorder %s2188_s5, %s1864_s9  ;;  %s77_s29 = int_to_ptr.vmem [resolvable:$true] %s76_s29 }
  0x28   :  { %p1868_p3 = scmp.lt.u32.totalorder %s1864_s9, %s2188_s5 }
  0x2a   :  { %p1870_p4 = pnand %p1868_p3, %p1865_p2 }
  0x2c   :  { %1873 = shalt.err (!%p1870_p4)
}
  0x2d   :  { %s1874_s14 = scalar_lea.vmem %s77_s29, 3072  ;;  %p1879_p6 = scmp.lt.s32.totalorder %s77_s29, %s77_s29 }
  0x2e   :  { %p1875_p5 = scmp.ne.s32.totalorder %s77_s29, %s1874_s14  ;;  %p1880_p7 = scmp.lt.s32.totalorder %s1874_s14, %s1874_s14 }
  0x30   :  { %p1881_p8 = por %p1880_p7, %p1879_p6 }
  0x32   :  { %p1882_p9 = pnand %p1881_p8, %p1875_p5 }
  0x34   :  { %1885 = shalt.err (!%p1882_p9)
}
  0x35   :  { %s2013_s3 = smov 64   ;;  %s2014_s15 = smov 4  }
  0x36   :  { %82 = dma.hbm_to_vmem [thread:$0]  %s2188_s5, 3072, %s77_s29, [#allocation12], %s2013_s3, %s2013_s3, %s2014_s15  }
  0x37   :  { %s2015_s18 = smov [#allocation2]   ;;  %s2016_s20 = smov [#allocation7]  }
  0x38   :  { %s23_s19 = sshll.u32 %s2015_s18, 4  ;;  %s45_s21 = sshll.u32 %s2016_s20, 4  ;;  %s24_s19 = int_to_ptr.vmem [resolvable:$true] %s23_s19  ;;  %s46_s21 = int_to_ptr.vmem [resolvable:$true] %s45_s21 }
  0x39   :  { %s1886_s24 = scalar_lea.hbm %s2183_s0, 128 }
  0x3a   :  { %p1887_p10 = scmp.ne.s32.totalorder %s2183_s0, %s1886_s24  ;;  %p1890_p11 = scmp.lt.u32.totalorder %s1886_s24, %s2183_s0 }
  0x3c   :  { %p1892_p12 = pnand %p1890_p11, %p1887_p10 }
  0x3e   :  { %1895 = shalt.err (!%p1892_p12)
}
  0x3f   :  { %s1896_s5 = scalar_lea.vmem %s24_s19, 128  ;;  %p1901_p0 = scmp.lt.s32.totalorder %s24_s19, %s24_s19 }
  0x40   :  { %p1897_p13 = scmp.ne.s32.totalorder %s24_s19, %s1896_s5  ;;  %p1902_p1 = scmp.lt.s32.totalorder %s1896_s5, %s1896_s5 }
  0x42   :  { %p1903_p2 = por %p1902_p1, %p1901_p0 }
  0x44   :  { %p1904_p3 = pnand %p1903_p2, %p1897_p13 }
  0x46   :  { %1907 = shalt.err (!%p1904_p3)
}
  0x47   :  { %26 = dma.hbm_to_vmem [thread:$0]  %s2183_s0, 128, %s24_s19, [#allocation3]  }
  0x48   :  { %s1908_s9 = scalar_lea.hbm %s2185_s2, 64 }
  0x49   :  { %p1909_p4 = scmp.ne.s32.totalorder %s2185_s2, %s1908_s9  ;;  %p1912_p5 = scmp.lt.u32.totalorder %s1908_s9, %s2185_s2 }
  0x4b   :  { %p1914_p6 = pnand %p1912_p5, %p1909_p4 }
  0x4d   :  { %1917 = shalt.err (!%p1914_p6)
}
  0x4e   :  { %s1918_s14 = scalar_lea.vmem %s46_s21, 64  ;;  %p1923_p8 = scmp.lt.s32.totalorder %s46_s21, %s46_s21 }
  0x4f   :  { %p1919_p7 = scmp.ne.s32.totalorder %s46_s21, %s1918_s14  ;;  %p1924_p9 = scmp.lt.s32.totalorder %s1918_s14, %s1918_s14 }
  0x51   :  { %p1925_p10 = por %p1924_p9, %p1923_p8 }
  0x53   :  { %p1926_p11 = pnand %p1925_p10, %p1919_p7 }
  0x55   :  { %1929 = shalt.err (!%p1926_p11)
}
  0x56   :  { %48 = dma.hbm_to_vmem [thread:$0]  %s2185_s2, 64, %s46_s21, [#allocation6]  }
  0x57   :  { %s2017_s15 = smov [#allocation10]   ;;  %s2018_s17 = smov [#allocation13]  }
  0x58   :  { %s67_s16 = sshll.u32 %s2017_s15, 4  ;;  %s89_s18 = sshll.u32 %s2018_s17, 4  ;;  %s68_s16 = int_to_ptr.vmem [resolvable:$true] %s67_s16  ;;  %s90_s18 = int_to_ptr.vmem [resolvable:$true] %s89_s18 }
  0x59   :  { %s1930_s22 = scalar_lea.hbm %s2187_s4, 48 }
  0x5a   :  { %p1931_p12 = scmp.ne.s32.totalorder %s2187_s4, %s1930_s22  ;;  %p1934_p13 = scmp.lt.u32.totalorder %s1930_s22, %s2187_s4 }
  0x5c   :  { %p1936_p0 = pnand %p1934_p13, %p1931_p12 }
  0x5e   :  { %1939 = shalt.err (!%p1936_p0)
}
  0x5f   :  { %s1940_s2 = scalar_lea.vmem %s68_s16, 48  ;;  %s1944_s21 = scalar_lea.vmem %s68_s16, 64 }
  0x60   :  { %p1941_p1 = scmp.ne.s32.totalorder %s68_s16, %s1940_s2  ;;  %p1945_p2 = scmp.lt.s32.totalorder %s68_s16, %s68_s16 }
  0x61   :  { %p1946_p3 = scmp.lt.s32.totalorder %s1944_s21, %s1940_s2 }
  0x63   :  { %p1947_p4 = por %p1946_p3, %p1945_p2 }
  0x65   :  { %p1948_p5 = pnand %p1947_p4, %p1941_p1 }
  0x67   :  { %1951 = shalt.err (!%p1948_p5)
}
  0x68   :  { %70 = dma.hbm_to_vmem [thread:$0]  %s2187_s4, 48, %s68_s16, [#allocation9]  }
  0x69   :  { %s1952_s29 = scalar_lea.hbm %s2189_s6, 16 }
  0x6a   :  { %p1953_p6 = scmp.ne.s32.totalorder %s2189_s6, %s1952_s29  ;;  %p1956_p7 = scmp.lt.u32.totalorder %s1952_s29, %s2189_s6 }
  0x6c   :  { %p1958_p8 = pnand %p1956_p7, %p1953_p6 }
  0x6e   :  { %1961 = shalt.err (!%p1958_p8)
}
  0x6f   :  { %s1962_s11 = scalar_lea.vmem %s90_s18, 16  ;;  %s1966_s12 = scalar_lea.vmem %s90_s18, 32 }
  0x70   :  { %p1963_p9 = scmp.ne.s32.totalorder %s90_s18, %s1962_s11  ;;  %p1967_p10 = scmp.lt.s32.totalorder %s90_s18, %s90_s18 }
  0x71   :  { %p1968_p11 = scmp.lt.s32.totalorder %s1966_s12, %s1962_s11 }
  0x73   :  { %p1969_p12 = por %p1968_p11, %p1967_p10 }
  0x75   :  { %p1970_p13 = pnand %p1969_p12, %p1963_p9 }
  0x77   :  { %1973 = shalt.err (!%p1970_p13)
}
  0x78   :  { %92 = dma.hbm_to_vmem [thread:$0]  %s2189_s6, 16, %s90_s18, [#allocation12]  }
  0x79   :  { %1996 = dma.done.wait [#allocation3], 128  }
  0x7a   :  { %1997 = vsyncadd [#allocation3], 4294967168 }
  0x7b   :  { %1998 = dma.done.wait [#allocation6], 1088  }
  0x7c   :  { %1999 = vsyncadd [#allocation6], 4294966208 }
  0x7d   :  { %2000 = dma.done.wait [#allocation9], 12336  }
  0x7e   :  { %2001 = vsyncadd [#allocation9], 4294954960 }
  0x7f   :  { %2002 = dma.done.wait [#allocation12], 3088  }
  0x80   :  { %2003 = vsyncadd [#allocation12], 4294964208  ;;  %v2019_v0 = vmov 0   ;;  %v1654_v1 = vld [vmem:[#allocation5 + $0x4] ss:$16 sps:$4 sm:$0xff]   ;;  %v115_v5 = vld [vmem:[#allocation2] sm:$0xff]  ;;  %v127_v61 = vlaneseq }
  0x81   :  { %223 = vmatprep.mubr.bf16.mxu0 %v2019_v0  ;;  %264 = vmatprep.mubr.bf16.mxu1 %v2019_v0  ;;  %v1656_v2 = vld [vmem:[#allocation5] ss:$16 sps:$4 sm:$0xff]   ;;  %v1657_v3 = vld [vmem:[#allocation5 + $0x24] ss:$16 sps:$4 sm:$0xff]   ;;  %v1660_v6 = vld [vmem:[#allocation5 + $0xc] ss:$16 sps:$4 sm:$0xff]   ;;  %v116_v9 = vpack.c.bf16 %v115_v5, %v115_v5 }
  0x82   :  { %191 = vmatprep.subr.bf16.mxu0 %v1654_v1  ;;  %v1659_v4 = vld [vmem:[#allocation5 + $0x20] ss:$16 sps:$4 sm:$0xff]   ;;  %v1662_v7 = vld [vmem:[#allocation5 + $0x8] ss:$16 sps:$4 sm:$0xff]   ;;  %232 = vmatprep.subr.bf16.mxu1 %v1660_v6  ;;  %v1663_v8 = vld [vmem:[#allocation5 + $0x2c] ss:$16 sps:$4 sm:$0xff]  }
  0x83   :  { %192 = vmatpush1.bf16.msra.mxu0 %v1656_v2  ;;  %233 = vmatpush1.bf16.msra.mxu1 %v1662_v7  ;;  %v1665_v10 = vld [vmem:[#allocation5 + $0x28] ss:$16 sps:$4 sm:$0xff]   ;;  %vm187_vm0 = vcmask 261120   ;;  %v1666_v12 = vld [vmem:[#allocation8] ss:$12 sps:$4 sm:$0xff]   ;;  %v2147_v62 = vshrl.u32 %v127_v61, 7 }
  0x84   :  { %193 = vmatprep.subr.bf16.mxu0 %v1657_v3  ;;  %v1668_v11 = vld [vmem:[#allocation8 + $0x4] ss:$12 sps:$4 sm:$0xff]   ;;  %234 = vmatprep.subr.bf16.mxu1 %v1663_v8  ;;  %v1671_v13 = vld [vmem:[#allocation8 + $0x1c] ss:$12 sps:$4 sm:$0xff]   ;;  %v1674_v15 = vld [vmem:[#allocation8 + $0x34] ss:$12 sps:$4 sm:$0xff]  }
  0x85   :  { %v1669_v14 = vld [vmem:[#allocation8 + $0x18] ss:$12 sps:$4 sm:$0xff]   ;;  %v1672_v16 = vld [vmem:[#allocation8 + $0x30] ss:$12 sps:$4 sm:$0xff]   ;;  %v1675_v18 = vld [vmem:[#allocation8 + $0x48] ss:$12 sps:$4 sm:$0xff]  }
  0x86   :  { %v1677_v17 = vld [vmem:[#allocation8 + $0x4c] ss:$12 sps:$4 sm:$0xff]   ;;  %v1693_v19 = vld [vmem:[#allocation8 + $0xc8] ss:$12 sps:$4 sm:$0xff]   ;;  %v1680_v21 = vld [vmem:[#allocation8 + $0x64] ss:$12 sps:$4 sm:$0xff]  }
  0x87   :  { %194 = vmatpush1.bf16.msra.mxu0 %v1659_v4  ;;  %235 = vmatpush1.bf16.msra.mxu1 %v1665_v10  ;;  %v1694_v20 = vld [vmem:[#allocation8 + $0x8] ss:$12 sps:$4 sm:$0xff]   ;;  %v1698_v22 = vld [vmem:[#allocation8 + $0xe0] ss:$12 sps:$4 sm:$0xff]   ;;  %v1703_v26 = vld [vmem:[#allocation8 + $0xf8] ss:$12 sps:$4 sm:$0xff]  }
  0x88   :  { %938 = vmatprep.subr.bf16.mxu0 %v1668_v11  ;;  %1536 = vmatprep.subr.bf16.mxu1 %v1693_v19  ;;  %v1699_v23 = vld [vmem:[#allocation8 + $0x20] ss:$12 sps:$4 sm:$0xff]   ;;  %v1683_v25 = vld [vmem:[#allocation8 + $0x7c] ss:$12 sps:$4 sm:$0xff]   ;;  %v1704_v27 = vld [vmem:[#allocation8 + $0x38] ss:$12 sps:$4 sm:$0xff]  }
  0x89   :  { %v1678_v24 = vld [vmem:[#allocation8 + $0x60] ss:$12 sps:$4 sm:$0xff]   ;;  %v1681_v28 = vld [vmem:[#allocation8 + $0x78] ss:$12 sps:$4 sm:$0xff]   ;;  %v1708_v30 = vld [vmem:[#allocation8 + $0x110] ss:$12 sps:$4 sm:$0xff]  }
  0x8a   :  { %1413 = vmatmul.mubr.msk.bf16.vlgmr.msra.gmra.mrb[0].mxu0 %vm187_vm0, %v116_v9  ;;  %1414 = vmatmul.mubr.msk.bf16.vlgmr.msra.gmra.mrb[0].mxu1 %vm187_vm0, %v116_v9  ;;  %v1686_v29 = vld [vmem:[#allocation8 + $0x94] ss:$12 sps:$4 sm:$0xff]   ;;  %v1709_v31 = vld [vmem:[#allocation8 + $0x50] ss:$12 sps:$4 sm:$0xff]   ;;  %v1689_v34 = vld [vmem:[#allocation8 + $0xac] ss:$12 sps:$4 sm:$0xff]  }
  0x8b   :  { %939 = vmatpush1.bf16.msra.mxu0 %v1666_v12  ;;  %1537 = vmatpush3.bf16.msra.mxu1 %v1694_v20  ;;  %v1684_v32 = vld [vmem:[#allocation8 + $0x90] ss:$12 sps:$4 sm:$0xff]   ;;  %v1713_v33 = vld [vmem:[#allocation8 + $0x128] ss:$12 sps:$4 sm:$0xff]   ;;  %v1718_v37 = vld [vmem:[#allocation8 + $0x140] ss:$12 sps:$4 sm:$0xff]  }
  0x8c   :  { %940 = vmatprep.subr.bf16.mxu0 %v1671_v13  ;;  %1538 = vmatprep.subr.bf16.mxu1 %v1698_v22  ;;  %v1714_v35 = vld [vmem:[#allocation8 + $0x68] ss:$12 sps:$4 sm:$0xff]   ;;  %v1692_v38 = vld [vmem:[#allocation8 + $0xc4] ss:$12 sps:$4 sm:$0xff]   ;;  %v1719_v39 = vld [vmem:[#allocation8 + $0x80] ss:$12 sps:$4 sm:$0xff]  }
  0x8d   :  { %v1687_v36 = vld [vmem:[#allocation8 + $0xa8] ss:$12 sps:$4 sm:$0xff]   ;;  %v1690_v40 = vld [vmem:[#allocation8 + $0xc0] ss:$12 sps:$4 sm:$0xff]   ;;  %v1695_v42 = vld [vmem:[#allocation8 + $0xd8] ss:$12 sps:$4 sm:$0xff]  }
  0x8e   :  { %v1697_v41 = vld [vmem:[#allocation8 + $0xdc] ss:$12 sps:$4 sm:$0xff]   ;;  %v1702_v43 = vld [vmem:[#allocation8 + $0xf4] ss:$12 sps:$4 sm:$0xff]   ;;  %v1707_v45 = vld [vmem:[#allocation8 + $0x10c] ss:$12 sps:$4 sm:$0xff]  }
  0x8f   :  { %941 = vmatpush1.bf16.msra.mxu0 %v1669_v14  ;;  %1539 = vmatpush3.bf16.msra.mxu1 %v1699_v23  ;;  %v1700_v44 = vld [vmem:[#allocation8 + $0xf0] ss:$12 sps:$4 sm:$0xff]   ;;  %v1705_v46 = vld [vmem:[#allocation8 + $0x108] ss:$12 sps:$4 sm:$0xff]   ;;  %v1710_v48 = vld [vmem:[#allocation8 + $0x120] ss:$12 sps:$4 sm:$0xff]  }
  0x90   :  { %942 = vmatprep.subr.bf16.mxu0 %v1674_v15  ;;  %1540 = vmatprep.subr.bf16.mxu1 %v1703_v26  ;;  %v1712_v47 = vld [vmem:[#allocation8 + $0x124] ss:$12 sps:$4 sm:$0xff]   ;;  %v1717_v49 = vld [vmem:[#allocation8 + $0x13c] ss:$12 sps:$4 sm:$0xff]   ;;  %v1722_v51 = vld [vmem:[#allocation8 + $0x154] ss:$12 sps:$4 sm:$0xff]  }
  0x91   :  { %v1715_v50 = vld [vmem:[#allocation8 + $0x138] ss:$12 sps:$4 sm:$0xff]   ;;  %v1720_v53 = vld [vmem:[#allocation8 + $0x150] ss:$12 sps:$4 sm:$0xff]   ;;  %v1725_v57 = vld [vmem:[#allocation8 + $0x168] ss:$12 sps:$4 sm:$0xff]  }
  0x92   :  { %v1723_v52 = vld [vmem:[#allocation8 + $0x158] ss:$12 sps:$4 sm:$0xff]   ;;  %v1728_v56 = vld [vmem:[#allocation8 + $0x170] ss:$12 sps:$4 sm:$0xff]   ;;  %v1733_v60 = vld [vmem:[#allocation8 + $0x248] ss:$12 sps:$4 sm:$0xff]  }
  0x93   :  { %943 = vmatpush1.bf16.msra.mxu0 %v1672_v16  ;;  %1541 = vmatpush3.bf16.msra.mxu1 %v1704_v27  ;;  %v1724_v54 = vld [vmem:[#allocation8 + $0x98] ss:$12 sps:$4 sm:$0xff]   ;;  %v1729_v58 = vld [vmem:[#allocation8 + $0xb0] ss:$12 sps:$4 sm:$0xff]   ;;  %v129_v63 = vsub.s32 0, %v2147_v62  ;;  %v133_v1 = vsub.s32 1, %v2147_v62 }
  0x94   :  { %944 = vmatprep.subr.bf16.mxu0 %v1677_v17  ;;  %1542 = vmatprep.subr.bf16.mxu1 %v1708_v30  ;;  %v1727_v55 = vld [vmem:[#allocation8 + $0x16c] ss:$12 sps:$4 sm:$0xff]   ;;  %v1732_v59 = vld [vmem:[#allocation8 + $0x184] ss:$12 sps:$4 sm:$0xff]   ;;  %v2150_v0 = vld [vmem:[#allocation7] sm:$0xf] }
  0x95   :  { %v130_v2 = vrot.slane %v2150_v0, %v129_v63  ;;  %v141_v3 = vsub.s32 3, %v2147_v62  ;;  %v134_v4 = vrot.slane %v2150_v0, %v133_v1  ;;  %v1730_v19 = vld [vmem:[#allocation8 + $0x180] ss:$12 sps:$4 sm:$0xff]   ;;  %v1734_v20 = vld [vmem:[#allocation8 + $0x188] ss:$12 sps:$4 sm:$0xff]   ;;  %vm2021_vm1 = vmmov 0  }
  0x96   :  { %v1737_v23 = vld [vmem:[#allocation8 + $0x19c] ss:$12 sps:$4 sm:$0xff]   ;;  %v1735_v27 = vld [vmem:[#allocation8 + $0x198] ss:$12 sps:$4 sm:$0xff]   ;;  %s2022_s6 = smov [#allocation14]  }
  0x97   :  { %945 = vmatpush1.bf16.msra.mxu0 %v1675_v18  ;;  %1543 = vmatpush3.bf16.msra.mxu1 %v1709_v31  ;;  %v142_v8 = vrot.slane %v2150_v0, %v141_v3  ;;  %v1743_v30 = vld [vmem:[#allocation8 + $0x278] ss:$12 sps:$4 sm:$0xff]   ;;  %v1740_v31 = vld [vmem:[#allocation8 + $0x1b0] ss:$12 sps:$4 sm:$0xff]   ;;  %s1393_s14 = sshll.u32 %s2022_s6, 4  ;;  %s1394_s14 = int_to_ptr.vmem [resolvable:$true] %s1393_s14 }
  0x98   :  { %946 = vmatprep.subr.bf16.mxu0 %v1680_v21  ;;  %1544 = vmatprep.subr.bf16.mxu1 %v1713_v33  ;;  %v1747_v33 = vld [vmem:[#allocation8 + $0x1cc] ss:$12 sps:$4 sm:$0xff]   ;;  %s1974_s0 = scalar_lea.vmem %s1394_s14, 128  ;;  %p1979_p1 = scmp.lt.s32.totalorder %s1394_s14, %s1394_s14 }
  0x99   :  { %v1773_v61 = vld [vmem:[#allocation8 + $0x258] ss:$12 sps:$4 sm:$0xff]   ;;  %p1975_p0 = scmp.ne.s32.totalorder %s1394_s14, %s1974_s0  ;;  %p1980_p2 = scmp.lt.s32.totalorder %s1974_s0, %s1974_s0 }
  0x9a   :  { %v1781_v3 = vld [vmem:[#allocation8 + $0x28c] ss:$12 sps:$4 sm:$0xff]  }
  0x9b   :  { %947 = vmatpush1.bf16.msra.mxu0 %v1678_v24  ;;  %1545 = vmatpush3.bf16.msra.mxu1 %v1714_v35  ;;  %v1738_v24 = vld [vmem:[#allocation8 + $0x260] ss:$12 sps:$4 sm:$0xff]   ;;  %v1745_v35 = vld [vmem:[#allocation8 + $0x1c8] ss:$12 sps:$4 sm:$0xff]   ;;  %p1981_p3 = por %p1980_p2, %p1979_p1 }
  0x9c   :  { %948 = vmatprep.subr.bf16.mxu0 %v1683_v25  ;;  %1546 = vmatprep.subr.bf16.mxu1 %v1718_v37  ;;  %v1752_v37 = vld [vmem:[#allocation8 + $0x1e4] ss:$12 sps:$4 sm:$0xff]  }
  0x9d   :  { %p1982_p4 = pnand %p1981_p3, %p1975_p0 }
  0x9f   :  { %949 = vmatpush1.bf16.msra.mxu0 %v1681_v28  ;;  %1547 = vmatpush3.bf16.msra.mxu1 %v1719_v39  ;;  %v1739_v28 = vld [vmem:[#allocation8 + $0x1a0] ss:$12 sps:$4 sm:$0xff]   ;;  %v137_v39 = vsub.s32 2, %v2147_v62  ;;  %v1812_v62 = vld [vmem:[#allocation11 + $0x90] sm:$0xff]  }
  0xa0   :  { %950 = vmatprep.subr.bf16.mxu0 %v1686_v29  ;;  %1548 = vmatprep.subr.bf16.mxu1 %v1723_v52  ;;  %v1742_v29 = vld [vmem:[#allocation8 + $0x1b4] ss:$12 sps:$4 sm:$0xff]   ;;  %v1767_v52 = vld [vmem:[#allocation8 + $0x22c] ss:$12 sps:$4 sm:$0xff]  }
  0xa3   :  { %951 = vmatpush1.bf16.msra.mxu0 %v1684_v32  ;;  %1549 = vmatpush3.bf16.msra.mxu1 %v1724_v54  ;;  %v1744_v32 = vld [vmem:[#allocation8 + $0x1b8] ss:$12 sps:$4 sm:$0xff]  }
  0xa4   :  { %952 = vmatprep.subr.bf16.mxu0 %v1689_v34  ;;  %1550 = vmatprep.subr.bf16.mxu1 %v1728_v56  ;;  %v1748_v34 = vld [vmem:[#allocation8 + $0x290] ss:$12 sps:$4 sm:$0xff]  }
  0xa5   :  { %v1769_v56 = vld [vmem:[#allocation8 + $0x230] ss:$12 sps:$4 sm:$0xff]  }
  0xa7   :  { %953 = vmatpush1.bf16.msra.mxu0 %v1687_v36  ;;  %1551 = vmatpush3.bf16.msra.mxu1 %v1729_v58  ;;  %v1749_v36 = vld [vmem:[#allocation8 + $0x1d0] ss:$12 sps:$4 sm:$0xff]  }
  0xa8   :  { %954 = vmatprep.subr.bf16.mxu0 %v1692_v38  ;;  %1558 = vmatprep.subr.bf16.mxu1 %v1733_v60  ;;  %v1753_v38 = vld [vmem:[#allocation8 + $0x2a8] ss:$12 sps:$4 sm:$0xff]  }
  0xa9   :  { %v1775_v60 = vld [vmem:[#allocation8 + $0x25c] ss:$12 sps:$4 sm:$0xff]  }
  0xab   :  { %955 = vmatpush1.bf16.msra.mxu0 %v1690_v40  ;;  %v1750_v40 = vld [vmem:[#allocation8 + $0x1e0] ss:$12 sps:$4 sm:$0xff]  }
  0xac   :  { %956 = vmatprep.subr.bf16.mxu0 %v1697_v41  ;;  %v1754_v41 = vld [vmem:[#allocation8 + $0x1e8] ss:$12 sps:$4 sm:$0xff]  }
  0xaf   :  { %957 = vmatpush1.bf16.msra.mxu0 %v1695_v42  ;;  %v1757_v42 = vld [vmem:[#allocation8 + $0x1fc] ss:$12 sps:$4 sm:$0xff]  }
  0xb0   :  { %958 = vmatprep.subr.bf16.mxu0 %v1702_v43  ;;  %v1758_v43 = vld [vmem:[#allocation8 + $0x2c0] ss:$12 sps:$4 sm:$0xff]  }
  0xb3   :  { %959 = vmatpush1.bf16.msra.mxu0 %v1700_v44  ;;  %v138_v44 = vrot.slane %v2150_v0, %v137_v39  ;;  %v1778_v0 = vld [vmem:[#allocation8 + $0x274] ss:$12 sps:$4 sm:$0xff]  }
  0xb4   :  { %960 = vmatprep.subr.bf16.mxu0 %v1707_v45  ;;  %v1755_v45 = vld [vmem:[#allocation8 + $0x1f8] ss:$12 sps:$4 sm:$0xff]  }
  0xb7   :  { %961 = vmatpush1.bf16.msra.mxu0 %v1705_v46  ;;  %v1759_v46 = vld [vmem:[#allocation8 + $0x200] ss:$12 sps:$4 sm:$0xff]  }
  0xb8   :  { %962 = vmatprep.subr.bf16.mxu0 %v1712_v47  ;;  %v1762_v47 = vld [vmem:[#allocation8 + $0x214] ss:$12 sps:$4 sm:$0xff]  }
  0xbb   :  { %963 = vmatpush1.bf16.msra.mxu0 %v1710_v48  ;;  %v1763_v48 = vld [vmem:[#allocation8 + $0x2d8] ss:$12 sps:$4 sm:$0xff]  }
  0xbc   :  { %964 = vmatprep.subr.bf16.mxu0 %v1717_v49 }
  0xbf   :  { %965 = vmatpush1.bf16.msra.mxu0 %v1715_v50  ;;  %v1760_v50 = vld [vmem:[#allocation8 + $0x210] ss:$12 sps:$4 sm:$0xff]  }
  0xc0   :  { %966 = vmatprep.subr.bf16.mxu0 %v1722_v51  ;;  %v1764_v51 = vld [vmem:[#allocation8 + $0x218] ss:$12 sps:$4 sm:$0xff]  }
  0xc3   :  { %967 = vmatpush1.bf16.msra.mxu0 %v1720_v53  ;;  %v1768_v53 = vld [vmem:[#allocation8 + $0x2f0] ss:$12 sps:$4 sm:$0xff]  }
  0xc4   :  { %968 = vmatprep.subr.bf16.mxu0 %v1727_v55  ;;  %v1765_v55 = vld [vmem:[#allocation8 + $0x228] ss:$12 sps:$4 sm:$0xff]  }
  0xc7   :  { %969 = vmatpush1.bf16.msra.mxu0 %v1725_v57  ;;  %v1772_v57 = vld [vmem:[#allocation8 + $0x244] ss:$12 sps:$4 sm:$0xff]  }
  0xc8   :  { %979 = vmatprep.subr.bf16.mxu0 %v1732_v59  ;;  %v1770_v59 = vld [vmem:[#allocation8 + $0x240] ss:$12 sps:$4 sm:$0xff]  }
 0x15d   :  { %v225_v5 = vpop.f32.mrb[0].mxu0  ;;  %v266_v13 = vpop.f32.mrb[0].mxu1 }
 0x15e   :  { %v226_v6 = vadd.f32 %v225_v5, %v130_v2  ;;  %v227_v7 = vpop.f32.mrb[1].mxu0  ;;  %v268_v15 = vpop.f32.mrb[1].mxu1  ;;  %v267_v49 = vadd.f32 %v266_v13, %v138_v44  ;;  %v1776_v2 = vld [vmem:[#allocation8 + $0x270] ss:$12 sps:$4 sm:$0xff]   ;;  %v1794_v13 = vld [vmem:[#allocation11 + $0x40] sm:$0xff]  }
 0x15f   :  { %v228_v9 = vadd.f32 %v227_v7, %v134_v4  ;;  %v229_v10 = vpop.f32.mrb[2].mxu0  ;;  %v269_v16 = vadd.f32 %v268_v15, %v142_v8  ;;  %v270_v17 = vpop.f32.mrb[2].mxu1  ;;  %v1779_v4 = vld [vmem:[#allocation8 + $0x288] ss:$12 sps:$4 sm:$0xff]   ;;  %v1784_v5 = vld [vmem:[#allocation8 + $0x2a4] ss:$12 sps:$4 sm:$0xff]  }
 0x160   :  { %v273_v11 = vmax.f32 %v226_v6, 0.0  ;;  %v230_v12 = vpop.f32.mrb[3].mxu0  ;;  %v271_v21 = vpop.f32.mrb[3].mxu1  ;;  %v275_v54 = vmax.f32 %v267_v49, 0.0  ;;  %v1782_v6 = vld [vmem:[#allocation8 + $0x2a0] ss:$12 sps:$4 sm:$0xff]  }
 0x161   :  { %v274_v14 = vmax.f32 %v228_v9, 0.0  ;;  %v276_v25 = vmax.f32 %v269_v16, 0.0  ;;  %v1787_v7 = vld [vmem:[#allocation8 + $0x2bc] ss:$12 sps:$4 sm:$0xff]   ;;  %v1785_v8 = vld [vmem:[#allocation8 + $0x2b8] ss:$12 sps:$4 sm:$0xff]  }
 0x162   :  { %v277_v22 = vpack.c.bf16 %v273_v11, %v273_v11  ;;  %v279_v58 = vpack.c.bf16 %v275_v54, %v275_v54  ;;  %v1790_v9 = vld [vmem:[#allocation8 + $0x2d4] ss:$12 sps:$4 sm:$0xff]   ;;  %v1788_v10 = vld [vmem:[#allocation8 + $0x2d0] ss:$12 sps:$4 sm:$0xff]   ;;  %v1793_v11 = vld [vmem:[#allocation8 + $0x2ec] ss:$12 sps:$4 sm:$0xff]  }
 0x163   :  { %v278_v18 = vpack.c.bf16 %v274_v14, %v274_v14  ;;  %v280_v26 = vpack.c.bf16 %v276_v25, %v276_v25  ;;  %v1791_v12 = vld [vmem:[#allocation8 + $0x2e8] ss:$12 sps:$4 sm:$0xff]   ;;  %v1796_v15 = vld [vmem:[#allocation11 + $0x48] sm:$0xff]  }
 0x164   :  { %v1795_v14 = vld [vmem:[#allocation11] sm:$0xff]   ;;  %v1797_v16 = vld [vmem:[#allocation11 + $0x8] sm:$0xff]   ;;  %v1798_v17 = vld [vmem:[#allocation11 + $0x50] sm:$0xff]  }
 0x165   :  { %970 = vmatprep.mubr.bf16.mxu0 %v278_v18  ;;  %1052 = vmatprep.mubr.bf16.mxu1 %v278_v18  ;;  %v1799_v18 = vld [vmem:[#allocation11 + $0x10] sm:$0xff]   ;;  %v1802_v21 = vld [vmem:[#allocation11 + $0x60] sm:$0xff]  }
 0x166   :  { %971 = vmatmul.mubr.bf16.vlgmr.msra.gmra.mrb[4].mxu0 %v277_v22  ;;  %1053 = vmatmul.mubr.bf16.vlgmr.msra.gmra.mrb[4].mxu1 %v277_v22  ;;  %v1803_v22 = vld [vmem:[#allocation11 + $0x20] sm:$0xff]   ;;  %v1806_v25 = vld [vmem:[#allocation11 + $0x70] sm:$0xff]  }
 0x167   :  { %980 = vmatpush1.bf16.msra.mxu0 %v1730_v19  ;;  %1559 = vmatpush3.bf16.msra.mxu1 %v1734_v20  ;;  %v1800_v19 = vld [vmem:[#allocation11 + $0x58] sm:$0xff]  }
 0x168   :  { %981 = vmatprep.subr.bf16.mxu0 %v1737_v23  ;;  %1560 = vmatprep.subr.bf16.mxu1 %v1738_v24  ;;  %v1801_v20 = vld [vmem:[#allocation11 + $0x18] sm:$0xff]   ;;  %v1804_v23 = vld [vmem:[#allocation11 + $0x68] sm:$0xff]  }
 0x169   :  { %1092 = vmatprep.mubr.bf16.mxu1 %v280_v26  ;;  %1011 = vmatprep.mubr.bf16.mxu0 %v280_v26  ;;  %v1805_v24 = vld [vmem:[#allocation11 + $0x28] sm:$0xff]   ;;  %v1807_v26 = vld [vmem:[#allocation11 + $0x30] sm:$0xff]  }
 0x16b   :  { %982 = vmatpush1.bf16.msra.mxu0 %v1735_v27  ;;  %1561 = vmatpush3.bf16.msra.mxu1 %v1739_v28  ;;  %v1808_v27 = vld [vmem:[#allocation11 + $0x78] sm:$0xff]  }
 0x16c   :  { %983 = vmatprep.subr.bf16.mxu0 %v1742_v29  ;;  %1562 = vmatprep.subr.bf16.mxu1 %v1743_v30  ;;  %v1809_v28 = vld [vmem:[#allocation11 + $0x38] sm:$0xff]   ;;  %v2020_v29 = vmov 0.0  }
 0x16f   :  { %984 = vmatpush1.bf16.msra.mxu0 %v1740_v31  ;;  %1563 = vmatpush3.bf16.msra.mxu1 %v1744_v32 }
 0x170   :  { %985 = vmatprep.subr.bf16.mxu0 %v1747_v33  ;;  %1564 = vmatprep.subr.bf16.mxu1 %v1748_v34 }
 0x173   :  { %986 = vmatpush1.bf16.msra.mxu0 %v1745_v35  ;;  %1565 = vmatpush3.bf16.msra.mxu1 %v1749_v36  ;;  %v409_v35 = vld [vmem:[#allocation10] sm:$0x7] }
 0x174   :  { %987 = vmatprep.subr.bf16.mxu0 %v1752_v37  ;;  %1566 = vmatprep.subr.bf16.mxu1 %v1753_v38  ;;  %v422_v36 = vrot.slane %v409_v35, %v137_v39 }
 0x177   :  { %988 = vmatpush1.bf16.msra.mxu0 %v1750_v40  ;;  %1567 = vmatpush3.bf16.msra.mxu1 %v1754_v41 }
 0x178   :  { %989 = vmatprep.subr.bf16.mxu0 %v1757_v42  ;;  %1568 = vmatprep.subr.bf16.mxu1 %v1758_v43 }
 0x17b   :  { %990 = vmatpush1.bf16.msra.mxu0 %v1755_v45  ;;  %1569 = vmatpush3.bf16.msra.mxu1 %v1759_v46  ;;  %v414_v45 = vrot.slane %v409_v35, %v129_v63  ;;  %v418_v46 = vrot.slane %v409_v35, %v133_v1  ;;  %v1813_v63 = vld [vmem:[#allocation11 + $0x98] sm:$0xff]   ;;  %v1814_v1 = vld [vmem:[#allocation11 + $0xa0] sm:$0xff]  }
 0x17c   :  { %991 = vmatprep.subr.bf16.mxu0 %v1762_v47  ;;  %1570 = vmatprep.subr.bf16.mxu1 %v1763_v48 }
 0x17f   :  { %992 = vmatpush1.bf16.msra.mxu0 %v1760_v50  ;;  %1571 = vmatpush3.bf16.msra.mxu1 %v1764_v51 }
 0x180   :  { %993 = vmatprep.subr.bf16.mxu0 %v1767_v52  ;;  %1572 = vmatprep.subr.bf16.mxu1 %v1768_v53 }
 0x183   :  { %994 = vmatpush1.bf16.msra.mxu0 %v1765_v55  ;;  %1573 = vmatpush3.bf16.msra.mxu1 %v1769_v56  ;;  %v1810_v55 = vld [vmem:[#allocation11 + $0x80] sm:$0xff]  }
 0x184   :  { %995 = vmatprep.subr.bf16.mxu0 %v1772_v57  ;;  %1580 = vmatprep.subr.bf16.mxu1 %v1794_v13  ;;  %v1811_v57 = vld [vmem:[#allocation11 + $0x88] sm:$0xff]  }
 0x186   :  { %1093 = vmatmul.mubr.bf16.vlgmr.msra.gmra.mrb[8].mxu1 %v279_v58 }
 0x187   :  { %996 = vmatpush1.bf16.msra.mxu0 %v1770_v59  ;;  %1581 = vmatpush3.bf16.msra.mxu1 %v1795_v14  ;;  %v1816_v59 = vld [vmem:[#allocation11 + $0xb0] sm:$0xff]  }
 0x188   :  { %997 = vmatprep.subr.bf16.mxu0 %v1775_v60  ;;  %1582 = vmatprep.subr.bf16.mxu1 %v1796_v15  ;;  %v1817_v60 = vld [vmem:[#allocation11 + $0xb8] sm:$0xff]  }
 0x18b   :  { %998 = vmatpush1.bf16.msra.mxu0 %v1773_v61  ;;  %1583 = vmatpush3.bf16.msra.mxu1 %v1797_v16 }
 0x18c   :  { %999 = vmatprep.subr.bf16.mxu0 %v1778_v0  ;;  %1584 = vmatprep.subr.bf16.mxu1 %v1798_v17 }
 0x18f   :  { %1000 = vmatpush1.bf16.msra.mxu0 %v1776_v2  ;;  %1585 = vmatpush3.bf16.msra.mxu1 %v1799_v18 }
 0x190   :  { %1001 = vmatprep.subr.bf16.mxu0 %v1781_v3  ;;  %1586 = vmatprep.subr.bf16.mxu1 %v1800_v19 }
 0x193   :  { %1002 = vmatpush1.bf16.msra.mxu0 %v1779_v4  ;;  %1587 = vmatpush3.bf16.msra.mxu1 %v1801_v20 }
 0x194   :  { %1003 = vmatprep.subr.bf16.mxu0 %v1784_v5  ;;  %1588 = vmatprep.subr.bf16.mxu1 %v1802_v21 }
 0x197   :  { %1004 = vmatpush1.bf16.msra.mxu0 %v1782_v6  ;;  %1589 = vmatpush3.bf16.msra.mxu1 %v1803_v22 }
 0x198   :  { %1005 = vmatprep.subr.bf16.mxu0 %v1787_v7  ;;  %1590 = vmatprep.subr.bf16.mxu1 %v1804_v23  ;;  %v1511_v7 = vld [vmem:[#allocation13] ss:$0 sm:$0xff] }
 0x19b   :  { %1006 = vmatpush1.bf16.msra.mxu0 %v1785_v8  ;;  %1591 = vmatpush3.bf16.msra.mxu1 %v1805_v24 }
 0x19c   :  { %1007 = vmatprep.subr.bf16.mxu0 %v1790_v9  ;;  %1592 = vmatprep.subr.bf16.mxu1 %v1806_v25 }
 0x19f   :  { %1008 = vmatpush1.bf16.msra.mxu0 %v1788_v10  ;;  %1593 = vmatpush3.bf16.msra.mxu1 %v1807_v26 }
 0x1a0   :  { %1009 = vmatprep.subr.bf16.mxu0 %v1793_v11  ;;  %1594 = vmatprep.subr.bf16.mxu1 %v1808_v27 }
 0x1a3   :  { %1010 = vmatpush1.bf16.msra.mxu0 %v1791_v12  ;;  %1595 = vmatpush3.bf16.msra.mxu1 %v1809_v28 }
 0x1a4   :  { %1611 = vmatprep.subr.bf16.mxu1 %v2020_v29 }
 0x1a6   :  { %1012 = vmatmul.mubr.bf16.vlgmr.msra.gmra.mrb[4].mxu0 %v279_v58  ;;  %v1815_v58 = vld [vmem:[#allocation11 + $0xa8] sm:$0xff]  }
 0x239   :  { %v1552_v30 = vpop.f32.mrb[4].mxu1 }
 0x23a   :  { %v1553_v31 = vpop.f32.mrb[5].mxu1 }
 0x23b   :  { %v1554_v32 = vadd.f32 %v1553_v31, %v1552_v30  ;;  %v1555_v33 = vpop.f32.mrb[6].mxu1 }
 0x23c   :  { %v1556_v34 = vpop.f32.mrb[7].mxu1 }
 0x23d   :  { %v1055_v40 = vadd.f32 %v1554_v32, %v422_v36 }
 0x259   :  { %v1574_v37 = vpop.f32.mrb[8].mxu1 }
 0x25a   :  { %v1575_v38 = vpop.f32.mrb[9].mxu1 }
 0x25b   :  { %v1576_v41 = vadd.f32 %v1575_v38, %v1574_v37  ;;  %v1577_v42 = vpop.f32.mrb[10].mxu1 }
 0x25c   :  { %v1578_v43 = vpop.f32.mrb[11].mxu1 }
 0x25d   :  { %v1095_v44 = vadd.f32 %v1576_v41, %v1055_v40 }
 0x25f   :  { %v1102_v61 = vmax.f32 %v1095_v44, 0.0 }
 0x261   :  { %v1105_v0 = vpack.c.bf16 %v1102_v61, %v1102_v61 }
 0x279   :  { %v1013_v47 = vpop.f32.mrb[4].mxu0 }
 0x27a   :  { %v1631_v48 = vadd.f32 %v1013_v47, %v414_v45  ;;  %v1015_v49 = vpop.f32.mrb[5].mxu0 }
 0x27b   :  { %v1632_v50 = vadd.f32 %v1015_v49, %v418_v46  ;;  %v1017_v51 = vpop.f32.mrb[6].mxu0 }
 0x27c   :  { %v1100_v52 = vmax.f32 %v1631_v48, 0.0  ;;  %v1018_v39 = vpop.f32.mrb[7].mxu0 }
 0x27d   :  { %v1101_v53 = vmax.f32 %v1632_v50, 0.0 }
 0x27e   :  { %v1103_v56 = vpack.c.bf16 %v1100_v52, %v1100_v52 }
 0x27f   :  { %v1104_v54 = vpack.c.bf16 %v1101_v53, %v1101_v53 }
 0x281   :  { %1337 = vmatprep.mubr.bf16.mxu1 %v1104_v54 }
 0x282   :  { %1338 = vmatmul.mubr.bf16.vlgmr.msra.gmra.mrb[12].mxu1 %v1103_v56 }
 0x283   :  { %1612 = vmatpush3.bf16.msra.mxu1 %v1810_v55  ;;  %1627 = vmatprep.mubr.msk.bf16.mxu1 %vm2021_vm1, %v2020_v29 }
 0x284   :  { %1613 = vmatprep.subr.bf16.mxu1 %v2020_v29 }
 0x287   :  { %1614 = vmatpush3.bf16.msra.mxu1 %v1811_v57 }
 0x288   :  { %1615 = vmatprep.subr.bf16.mxu1 %v2020_v29 }
 0x28b   :  { %1616 = vmatpush3.bf16.msra.mxu1 %v1812_v62 }
 0x28c   :  { %1617 = vmatprep.subr.bf16.mxu1 %v2020_v29 }
 0x28f   :  { %1618 = vmatpush3.bf16.msra.mxu1 %v1813_v63 }
 0x290   :  { %1619 = vmatprep.subr.bf16.mxu1 %v2020_v29 }
 0x293   :  { %1620 = vmatpush3.bf16.msra.mxu1 %v1814_v1 }
 0x294   :  { %1621 = vmatprep.subr.bf16.mxu1 %v2020_v29 }
 0x297   :  { %1622 = vmatpush3.bf16.msra.mxu1 %v1815_v58 }
 0x298   :  { %1623 = vmatprep.subr.bf16.mxu1 %v2020_v29 }
 0x29b   :  { %1624 = vmatpush3.bf16.msra.mxu1 %v1816_v59 }
 0x29c   :  { %1625 = vmatprep.subr.bf16.mxu1 %v2020_v29 }
 0x29f   :  { %1626 = vmatpush3.bf16.msra.mxu1 %v1817_v60 }
 0x2a2   :  { %1628 = vmatmul.mubr.bf16.vlgmr.msra.gmra.mrb[16].mxu1 %v1105_v0 }
 0x355   :  { %v1596_v2 = vpop.f32.mrb[12].mxu1 }
 0x356   :  { %v1597_v3 = vpop.f32.mrb[13].mxu1 }
 0x357   :  { %v1598_v4 = vadd.f32 %v1597_v3, %v1596_v2  ;;  %v1599_v5 = vpop.f32.mrb[14].mxu1 }
 0x358   :  { %v1600_v6 = vpop.f32.mrb[15].mxu1 }
 0x359   :  { %v1340_v8 = vadd.f32 %v1598_v4, %v1511_v7 }
 0x375   :  { %v1379_v9 = vpop.f32.mrb[16].mxu1 }
 0x376   :  { %v1380_v10 = vadd.f32 %v1379_v9, %v1340_v8  ;;  %v1629_v11 = vpop.f32.mrb[17].mxu1 }
 0x377   :  { %v1382_v12 = vpop.f32.mrb[18].mxu1 }
 0x378   :  { %1818 = vtanh.f32 %v1380_v10  ;;  %v1630_v13 = vpop.f32.mrb[19].mxu1 }
 0x382   :  { %v1819_v14 = vpop.eup %1818 }
 0x383   :  { %1386 = vst [vmem:[#allocation14] sm:$0xff] %v1819_v14 }
 0x384   :  { %1985 = shalt.err (!%p1982_p4)
}
 0x385   :  { %s1986_s16 = scalar_lea.hbm %s2190_s7, 128 }
 0x386   :  { %p1987_p5 = scmp.ne.s32.totalorder %s2190_s7, %s1986_s16  ;;  %p1990_p6 = scmp.lt.u32.totalorder %s1986_s16, %s2190_s7 }
 0x388   :  { %p1992_p7 = pnand %p1990_p6, %p1987_p5 }
 0x38a   :  { %1995 = shalt.err (!%p1992_p7)
}
 0x38b   :  { %1396 = dma.vmem_to_hbm [thread:$0]  %s1394_s14, 128, %s2190_s7, [#allocation4]  }
 0x38c   :  { %2004 = dma.done.wait [#allocation4], 128  }
 0x38d   :  { %2005 = vsyncadd [#allocation4], 4294967168 }
 0x38e   :  { %1400 = vsyncpa [#allocation3], 1 }
 0x38f   :  { %1401 = vsyncpa [#allocation6], 1 }
 0x390   :  { %1402 = vsyncpa [#allocation9], 1 }
 0x391   :  { %1403 = vsyncpa [#allocation12], 1 }
 0x392   :  { %1404 = vsyncpa [#allocation4], 1 }

</bundles_post_ra>
